<compile_context>
chip_gen: v7x
topology: tpu7x:2x2x1
jax: 0.10.0
libtpu: 0.0.40
codegen_flags: <defaults>
</compile_context>

<pallas_src>
import jax
import jax.numpy as jnp
from jax.experimental import pallas as pl
from jax.experimental.pallas import tpu as pltpu

_LANES = 128
_MIB = 1024 * 1024


def _round_up(v, m):
    return ((v + m - 1) // m) * m


def _vmem_capacity_bytes():
    # Generation-aware budget; conservative fallback (v7x: 64 MiB per TC).
    try:
        return int(pltpu.get_tpu_info().vmem_capacity_bytes)
    except Exception:
        return 64 * _MIB


def _min_steps(total_bytes):
    # Enough grid steps per core for the BlockSpec double-buffer to overlap
    # in-DMA / compute / out-DMA, and >=2 so both v7x TensorCores get work.
    if total_bytes >= 64 * _MIB:
        return 8
    if total_bytes >= 8 * _MIB:
        return 4
    if total_bytes >= 2 * _MIB:
        return 2
    return 1


def _lohi_kernel(params_ref, x_ref, o_ref):
    # params_ref: f32[2] in SMEM -> [lo, 1/(hi-lo)]
    lo = params_ref[0]
    inv_span = params_ref[1]
    xv = x_ref[...].astype(jnp.float32)
    o_ref[...] = ((xv - lo) * inv_span).astype(o_ref.dtype)


def lohi_normalize(x, lo, hi):
    """(x - lo) / (hi - lo), computed in a Pallas TPU kernel."""
    if not isinstance(lo, jax.Array) and not isinstance(hi, jax.Array):
        assert hi > lo

    lo_a = jnp.asarray(lo, jnp.float32).reshape(())
    hi_a = jnp.asarray(hi, jnp.float32).reshape(())
    params = jnp.stack([lo_a, jnp.float32(1.0) / (hi_a - lo_a)])

    orig_shape = x.shape
    in_dtype = x.dtype
    out_dtype = in_dtype if jnp.issubdtype(in_dtype, jnp.floating) else jnp.float32
    in_item = jnp.dtype(in_dtype).itemsize
    out_item = jnp.dtype(out_dtype).itemsize

    n = int(x.size)
    if n == 0:
        return jnp.zeros(orig_shape, out_dtype)

    # Sublane packing of the narrowest dtype touching VMEM (f32:8, bf16:16, i8:32).
    packing = 32 // min(in_item, out_item, 4)

    # Budget blocks on in+out bytes so int->f32 etc. can't blow VMEM.
    vmem_cap = _vmem_capacity_bytes()
    pair_budget = min(16 * _MIB, vmem_cap // 4)        # input-block + output-block bytes
    total_pair_bytes = n * (in_item + out_item)
    min_steps = _min_steps(total_pair_bytes)

    flat = jnp.ravel(x)
    cost = pl.CostEstimate(flops=2 * n, transcendentals=0,
                           bytes_accessed=total_pair_bytes)

    def _plan_steps(units, max_units_per_block):
        steps = max(pl.cdiv(units, max_units_per_block), min_steps)
        if steps > 1 and steps % 2 == 1:
            steps += 1            # even step count -> balanced megacore split
        return steps

    def _vmem_limit(blk_pair_bytes):
        return min(int(0.75 * vmem_cap),
                   max(16 * _MIB, 2 * blk_pair_bytes + 8 * _MIB))

    if n % _LANES == 0:
        # ---- lane-dense 2-D slab; no pad, no slice -----------------------
        lanes = _LANES
        for cand in (1024, 512, 256):                  # wider rows when divisible
            if n % cand == 0 and n // cand >= 8:
                lanes = cand
                break
        rows = n // lanes

        max_tr = max(packing,
                     (pair_budget // (lanes * (in_item + out_item)))
                     // packing * packing)
        n_steps = _plan_steps(rows, max_tr)
        tr = _round_up(pl.cdiv(rows, n_steps), packing)
        tr = min(tr, rows)                             # full-extent block is legal
        n_steps = pl.cdiv(rows, tr)                    # cdiv grid masks partial last block

        out2d = pl.pallas_call(
            _lohi_kernel,
            out_shape=jax.ShapeDtypeStruct((rows, lanes), out_dtype),
            grid=(n_steps,),
            in_specs=[
                pl.BlockSpec(memory_space=pltpu.MemorySpace.SMEM),   # [lo, 1/span]
                pl.BlockSpec((tr, lanes), lambda i: (i, 0)),
            ],
            out_specs=pl.BlockSpec((tr, lanes), lambda i: (i, 0)),
            compiler_params=pltpu.CompilerParams(
                dimension_semantics=("parallel",),
                vmem_limit_bytes=_vmem_limit(tr * lanes * (in_item + out_item))),
            cost_estimate=cost,
        )(params, flat.reshape(rows, lanes))
        return out2d.reshape(orig_shape)

    # ---- non-128-aligned sizes: 1-D blocks, cdiv grid masks the tail ------
    quant = packing * _LANES
    max_blk = max(quant,
                  (pair_budget // (in_item + out_item)) // quant * quant)
    n_steps = _plan_steps(n, max_blk)
    blk = _round_up(pl.cdiv(n, n_steps), quant)
    blk = min(blk, n)                                  # full-extent block is legal
    n_steps = pl.cdiv(n, blk)

    out_flat = pl.pallas_call(
        _lohi_kernel,
        out_shape=jax.ShapeDtypeStruct((n,), out_dtype),
        grid=(n_steps,),
        in_specs=[
            pl.BlockSpec(memory_space=pltpu.MemorySpace.SMEM),       # [lo, 1/span]
            pl.BlockSpec((blk,), lambda i: (i,)),
        ],
        out_specs=pl.BlockSpec((blk,), lambda i: (i,)),
        compiler_params=pltpu.CompilerParams(
            dimension_semantics=("parallel",),
            vmem_limit_bytes=_vmem_limit(blk * (in_item + out_item))),
        cost_estimate=cost,
    )(params, flat)
    return out_flat.reshape(orig_shape)


if __name__ == "__main__":
    key = jax.random.PRNGKey(0)
    lo, hi = -1.0, 5.0

    # Small NCHW input consistent with typical usage of the module (128-aligned path).
    x = jax.random.uniform(key, (2, 4, 16, 16), dtype=jnp.float32,
                           minval=-3.0, maxval=7.0)
    y = jax.block_until_ready(lohi_normalize(x, lo, hi))
    y_ref = (x - lo) / (hi - lo)
    assert y.shape == x.shape and y.dtype == x.dtype
    assert jnp.allclose(y, y_ref, atol=1e-6, rtol=1e-5)

    # Non-128-aligned element count exercises the pad-free 1-D path.
    x2 = jax.random.uniform(jax.random.PRNGKey(1), (3, 5, 7), dtype=jnp.float32,
                            minval=-3.0, maxval=7.0)
    y2 = jax.block_until_ready(lohi_normalize(x2, lo, hi))
    assert jnp.allclose(y2, (x2 - lo) / (hi - lo), atol=1e-6, rtol=1e-5)

    print("KERNEL_OK")
</pallas_src>

<mosaic_0001>
module attributes {stable_mosaic.version = 11 : i64} {
  func.func @_lohi_kernel(%arg0: i32, %arg1: memref<2xf32, #tpu.memory_space<smem>>, %arg2: memref<8x256xf32, #tpu.memory_space<vmem>>, %arg3: memref<8x256xf32, #tpu.memory_space<vmem>>) attributes {dimension_semantics = [#tpu.dimension_semantics<parallel>], iteration_bounds = array<i64: 1>, scalar_prefetch = 0 : i64, scratch_operands = 0 : i64, tpu.core_type = #tpu.core_type<tc>, window_params = [{transform_indices = @transform_0, window_bounds = array<i64: 2>}, {transform_indices = @transform_1, window_bounds = array<i64: 8, 256>}, {transform_indices = @transform_2, window_bounds = array<i64: 8, 256>}]} {
    %c0 = arith.constant 0 : index
    %0 = memref.load %arg1[%c0] : memref<2xf32, #tpu.memory_space<smem>>
    %c1 = arith.constant 1 : index
    %1 = memref.load %arg1[%c1] : memref<2xf32, #tpu.memory_space<smem>>
    %c0_0 = arith.constant 0 : index
    %c0_1 = arith.constant 0 : index
    %2 = vector.load %arg2[%c0_0, %c0_1] : memref<8x256xf32, #tpu.memory_space<vmem>>, vector<8x256xf32>
    %3 = vector.broadcast %0 : f32 to vector<8x256xf32>
    %4 = arith.subf %2, %3 : vector<8x256xf32>
    %5 = vector.broadcast %1 : f32 to vector<8x256xf32>
    %6 = arith.mulf %4, %5 : vector<8x256xf32>
    %c0_2 = arith.constant 0 : index
    %c0_3 = arith.constant 0 : index
    %7 = vector.load %arg3[%c0_2, %c0_3] : memref<8x256xf32, #tpu.memory_space<vmem>>, vector<8x256xf32>
    tpu.vector_store %arg3[%c0_2, %c0_3], %6 {strides = array<i32>} : memref<8x256xf32, #tpu.memory_space<vmem>>, vector<8x256xf32>,
    return
  }
  func.func @transform_0(%arg0: i32) -> i32 {
    %c0_i32 = arith.constant 0 : i32
    %c0_i32_0 = arith.constant 0 : i32
    return %c0_i32 : i32
  }
  func.func @transform_1(%arg0: i32) -> (i32, i32) {
    %c0_i32 = arith.constant 0 : i32
    %c0_i32_0 = arith.constant 0 : i32
    return %arg0, %c0_i32 : i32, i32
  }
  func.func @transform_2(%arg0: i32) -> (i32, i32) {
    %c0_i32 = arith.constant 0 : i32
    %c0_i32_0 = arith.constant 0 : i32
    return %arg0, %c0_i32 : i32, i32
  }
}

</mosaic_0001>

<bundles_post_ra>
// kernel: tpu_custom_call.1
= control target key start
LH: loop header
LB: loop body
LE: loop exit
PB: predicated region body
PF: predicated region fallthrough
CT: control target
= control target key end

     0   :  { %7 = vsyncpa [#allocation5], 0  ;;  %s181_s0 = inlined_call_operand.hbm [shape: f32[2], index: 0, kind: input, shape index: {}]   ;;  %s182_s1 = inlined_call_operand.hbm [shape: f32[8,256], index: 1, kind: input, shape index: {}]   ;;  %s183_s2 = inlined_call_operand.hbm [shape: f32[8,256], index: 2, kind: output, shape index: {}]  }
   0x1   :  { %8 = vsyncpa [#allocation3], 0 }
   0x2   :  { %9 = vsyncpa [#allocation4], 0  ;;  %s67_s11 = scalar_lea.hbm %s181_s0, 16 }
   0x3   :  { %p68_p0 = scmp.ne.s32.totalorder %s181_s0, %s67_s11  ;;  %p71_p1 = scmp.lt.u32.totalorder %s67_s11, %s181_s0 }
   0x5   :  { %p73_p2 = pnand %p71_p1, %p68_p0 }
   0x7   :  { %76 = shalt.err (!%p73_p2)
}
   0x8   :  { %s127_s16 = smov [#allocation2]   ;;  %s128_s19 = smov [#allocation6]  }
   0x9   :  { %17 = dma.hbm_to_smem %s181_s0, 16, %s127_s16, [#allocation5]  }
   0xa   :  { %s24_s20 = sshll.u32 %s128_s19, 4  ;;  %s77_s23 = scalar_lea.hbm %s182_s1, 256  ;;  %s25_s20 = int_to_ptr.vmem [resolvable:$true] %s24_s20 }
   0xb   :  { %p78_p3 = scmp.ne.s32.totalorder %s182_s1, %s77_s23  ;;  %p81_p4 = scmp.lt.u32.totalorder %s77_s23, %s182_s1 }
   0xd   :  { %p83_p5 = pnand %p81_p4, %p78_p3 }
   0xf   :  { %86 = shalt.err (!%p83_p5)
}
  0x10   :  { %s87_s28 = scalar_lea.vmem %s25_s20, 256  ;;  %p92_p7 = scmp.lt.s32.totalorder %s25_s20, %s25_s20 }
  0x11   :  { %p88_p6 = scmp.ne.s32.totalorder %s25_s20, %s87_s28  ;;  %p93_p8 = scmp.lt.s32.totalorder %s87_s28, %s87_s28 }
  0x13   :  { %p94_p9 = por %p93_p8, %p92_p7 }
  0x15   :  { %p95_p10 = pnand %p94_p9, %p88_p6 }
  0x17   :  { %98 = shalt.err (!%p95_p10)
}
  0x18   :  { %27 = dma.hbm_to_vmem [thread:$0]  %s182_s1, 256, %s25_s20, [#allocation3]  }
  0x19   :  { %121 = dma.done.wait [#allocation5], 16  }
  0x1a   :  { %122 = vsyncadd [#allocation5], 4294967280 }
  0x1b   :  { %123 = dma.done.wait [#allocation3], 256  }
  0x1c   :  { %124 = vsyncadd [#allocation3], 4294967040 }
  0x1d   :  { %34 = sfence }
  0x1e   :  { %s35_s30 = sld [smem:[#allocation2]]  ;;  %s63_s3 = sld [smem:[#allocation2 + $0x1]]  ;;  %v37_v0 = vld [vmem:[#allocation6] sm:$0xff]  ;;  %v38_v1 = vld [vmem:[#allocation6 + $0x8] sm:$0xff] }
  0x1f   :  { %s129_s4 = smov [#allocation7]  }
  0x20   :  { %s53_s5 = sshll.u32 %s129_s4, 4  ;;  %s54_s5 = int_to_ptr.vmem [resolvable:$true] %s53_s5 }
  0x21   :  { %s99_s1 = scalar_lea.vmem %s54_s5, 256  ;;  %p104_p12 = scmp.lt.s32.totalorder %s54_s5, %s54_s5 }
  0x22   :  { %p100_p11 = scmp.ne.s32.totalorder %s54_s5, %s99_s1  ;;  %p105_p13 = scmp.lt.s32.totalorder %s99_s1, %s99_s1 }
  0x24   :  { %v39_v2 = vstv %s35_s30  ;;  %v42_v3 = vstv %s63_s3  ;;  %p106_p0 = por %p105_p13, %p104_p12 }
  0x25   :  { %v40_v4 = vsub.f32 %v37_v0, %v39_v2  ;;  %v41_v5 = vsub.f32 %v38_v1, %v39_v2 }
  0x26   :  { %p107_p1 = pnand %p106_p0, %p100_p11 }
  0x27   :  { %v43_v6 = vmul.f32 %v42_v3, %v40_v4  ;;  %v44_v7 = vmul.f32 %v42_v3, %v41_v5 }
  0x29   :  { %45 = vst [vmem:[#allocation7] sm:$0xff] %v43_v6  ;;  %46 = vst [vmem:[#allocation7 + $0x8] sm:$0xff] %v44_v7 }
  0x2a   :  { %110 = shalt.err (!%p107_p1)
}
  0x2b   :  { %s111_s8 = scalar_lea.hbm %s183_s2, 256 }
  0x2c   :  { %p112_p2 = scmp.ne.s32.totalorder %s183_s2, %s111_s8  ;;  %p115_p3 = scmp.lt.u32.totalorder %s111_s8, %s183_s2 }
  0x2e   :  { %p117_p4 = pnand %p115_p3, %p112_p2 }
  0x30   :  { %120 = shalt.err (!%p117_p4)
}
  0x31   :  { %56 = dma.vmem_to_hbm [thread:$0]  %s54_s5, 256, %s183_s2, [#allocation4]  }
  0x32   :  { %125 = dma.done.wait [#allocation4], 256  }
  0x33   :  { %126 = vsyncadd [#allocation4], 4294967040 }
  0x34   :  { %60 = vsyncpa [#allocation3], 1 }
  0x35   :  { %61 = vsyncpa [#allocation4], 1 }
  0x36   :  { %62 = vsyncpa [#allocation5], 1 }

</bundles_post_ra>
